<compile_context>
chip_gen: v7x
topology: tpu7x:2x2x1
jax: 0.10.0
libtpu: 0.0.40
codegen_flags: <defaults>
</compile_context>

<pallas_src>
import math
import functools

import jax
import jax.numpy as jnp
from jax.experimental import pallas as pl
from jax.experimental.pallas import tpu as pltpu


# ----------------------------- kernel ---------------------------------------

def _softplus(x):
    # Matches F.softplus (beta=1, threshold=20): x for x > 20, log1p(exp(x)) otherwise.
    return jnp.where(x > 20.0, x, jnp.log1p(jnp.exp(jnp.minimum(x, 20.0))))


def policy_net_kernel(stats_ref, x_ref, w1_ref, b1_ref, lnw_ref, lnb_ref,
                      wh_ref, bh_ref, eps_ref,
                      out_ref, *, action_dim, action_bound):
    # --- global standardization: stats computed once in the wrapper, applied here.
    mean = stats_ref[0]
    inv_std = stats_ref[1]
    x = (x_ref[...].astype(jnp.float32) - mean) * inv_std

    # --- fc1: x @ W1 + b1  (MXU)
    h = jnp.dot(x, w1_ref[...], preferred_element_type=jnp.float32) + b1_ref[...]

    # --- LayerNorm(hidden_dim), eps=1e-5, elementwise affine
    h_mean = jnp.mean(h, axis=-1, keepdims=True)
    h_var = jnp.mean((h - h_mean) ** 2, axis=-1, keepdims=True)
    h_norm = (h - h_mean) * jax.lax.rsqrt(h_var + 1e-5)
    h_norm = h_norm * lnw_ref[...] + lnb_ref[...]

    # --- softplus
    xx = _softplus(h_norm)

    # --- fused heads: ONE matmul for [mu || std_pre], result kept in registers
    heads = (jnp.dot(xx, wh_ref[...], preferred_element_type=jnp.float32)
             + bh_ref[...])
    mu = heads[:, :action_dim]
    std = _softplus(heads[:, action_dim:])

    # --- Normal(mu, std).rsample() with externally supplied eps ~ N(0, 1)
    eps = eps_ref[...]
    sample = mu + std * eps

    # --- Normal log_prob at the sample:
    #     -(sample-mu)^2/(2 std^2) - log(std) - 0.5*log(2*pi) == -eps^2/2 - log(std) - 0.5*log(2*pi)
    log_prob = -0.5 * eps * eps - jnp.log(std) - 0.5 * math.log(2.0 * math.pi)

    # --- tanh squash.
    # TODO(synk): the reference applies tanh TWICE in the correction term
    # (log(1 - tanh(tanh(sample))^2 + 1e-7)); reproduced exactly, even though it
    # is not the standard SAC log-det correction.
    action = jnp.tanh(sample)
    log_prob = log_prob - jnp.log(1.0 - jnp.tanh(action) ** 2 + 1e-7)
    action = action * action_bound

    # --- one full-tile, un-sliced store: [action || log_prob]
    out_ref[...] = jnp.concatenate([action, log_prob], axis=-1)


# ----------------------------- wrapper ---------------------------------------

def _choose_tile_b(B):
    """Pick a batch tile: big (cap 1024) to amortize per-step overhead, but with
    >=2 grid steps when the batch allows so v7x's 2 TensorCores both get work."""
    if B <= 8:
        return B                      # single full-batch block (full-dim block is legal)
    target = max(8, (B + 1) // 2)     # ensure at least two grid steps
    for t in (1024, 512, 256, 128, 64, 32, 16, 8):
        if t <= target:
            return t
    return 8


def prepare_params(params):
    """One-time parameter prep (transposes / reshapes / head fusion).

    Call this ONCE and reuse the result — do not redo it on every forward call.
    """
    return {
        "w1": jnp.asarray(params["w1"].T),                         # [state, hidden]
        "b1": jnp.asarray(params["b1"]).reshape(1, -1),            # [1, hidden]
        "ln_w": jnp.asarray(params["ln_w"]).reshape(1, -1),        # [1, hidden]
        "ln_b": jnp.asarray(params["ln_b"]).reshape(1, -1),        # [1, hidden]
        # fused heads: [hidden, 2*action_dim] = [w_mu.T || w_std.T]
        "w_heads": jnp.concatenate([params["w_mu"].T, params["w_std"].T], axis=1),
        "b_heads": jnp.concatenate([params["b_mu"], params["b_std"]]).reshape(1, -1),
    }


def policy_net_forward(x, prepared, eps, action_bound, *, tile_b=None):
    """x: [B, state_dim] f32. eps: [B, action_dim] f32 ~ N(0,1). prepared: prepare_params(...)."""
    B, state_dim = x.shape
    hidden_dim = prepared["w1"].shape[1]
    two_a = prepared["w_heads"].shape[1]
    action_dim = two_a // 2

    # Global standardization stats: single pass (sum + sum-of-squares, fused by
    # XLA into one read of x). torch.std is unbiased -> divide by n-1.
    n = x.size
    xf = x.astype(jnp.float32)
    s1 = jnp.sum(xf)
    s2 = jnp.sum(xf * xf)
    mean = s1 / n
    var = (s2 - n * mean * mean) / (n - 1)
    stats = jnp.stack([mean, jax.lax.rsqrt(var)]).astype(jnp.float32)

    if tile_b is None:
        tile_b = _choose_tile_b(B)

    # Pad batch to a multiple of tile_b; padded rows are dropped afterwards.
    b_pad = ((B + tile_b - 1) // tile_b) * tile_b
    if b_pad != B:
        x = jnp.pad(x, ((0, b_pad - B), (0, 0)))
        eps = jnp.pad(eps, ((0, b_pad - B), (0, 0)))
    grid = (b_pad // tile_b,)

    def full_spec(shape):
        return pl.BlockSpec(shape, lambda i: (0, 0))

    kernel = functools.partial(policy_net_kernel,
                               action_dim=action_dim,
                               action_bound=float(action_bound))

    out = pl.pallas_call(
        kernel,
        out_shape=jax.ShapeDtypeStruct((b_pad, two_a), jnp.float32),
        grid=grid,
        in_specs=[
            pl.BlockSpec(memory_space=pltpu.MemorySpace.SMEM),         # stats (2,)
            pl.BlockSpec((tile_b, state_dim), lambda i: (i, 0)),       # x tile
            full_spec((state_dim, hidden_dim)),                        # w1
            full_spec((1, hidden_dim)),                                # b1
            full_spec((1, hidden_dim)),                                # ln_w
            full_spec((1, hidden_dim)),                                # ln_b
            full_spec((hidden_dim, two_a)),                            # w_heads
            full_spec((1, two_a)),                                     # b_heads
            pl.BlockSpec((tile_b, action_dim), lambda i: (i, 0)),      # eps tile
        ],
        out_specs=pl.BlockSpec((tile_b, two_a), lambda i: (i, 0)),     # action||logp
        compiler_params=pltpu.CompilerParams(
            dimension_semantics=("parallel",),          # batch tiles split across TCs
            vmem_limit_bytes=32 * 1024 * 1024,          # safe on v5e/v6e/v7x; tiles are tiny
        ),
    )(stats, x, prepared["w1"], prepared["b1"], prepared["ln_w"],
      prepared["ln_b"], prepared["w_heads"], prepared["b_heads"], eps)

    action = out[:B, :action_dim]
    log_prob = out[:B, action_dim:]
    return action, log_prob


# ----------------------------- params ----------------------------------------

def xavier_uniform(key, out_dim, in_dim, gain):
    bound = gain * math.sqrt(6.0 / (in_dim + out_dim))
    return jax.random.uniform(key, (out_dim, in_dim), jnp.float32, -bound, bound)


def init_params(key, state_dim, hidden_dim, action_dim):
    k1, k2, k3 = jax.random.split(key, 3)
    return {
        "w1": xavier_uniform(k1, hidden_dim, state_dim, 0.1),
        "b1": jnp.zeros((hidden_dim,), jnp.float32),
        "ln_w": jnp.ones((hidden_dim,), jnp.float32),
        "ln_b": jnp.zeros((hidden_dim,), jnp.float32),
        "w_mu": xavier_uniform(k2, action_dim, hidden_dim, 0.1),
        "b_mu": jnp.zeros((action_dim,), jnp.float32),
        "w_std": xavier_uniform(k3, action_dim, hidden_dim, 0.1),
        "b_std": jnp.zeros((action_dim,), jnp.float32),
    }


# ----------------------------- reference (pure JAX) ---------------------------

def reference_forward(x, params, eps, action_bound):
    n = x.size
    mean = jnp.mean(x)
    var = jnp.sum((x - mean) ** 2) / (n - 1)
    x = (x - mean) / jnp.sqrt(var)
    h = x @ params["w1"].T + params["b1"]
    hm = jnp.mean(h, axis=-1, keepdims=True)
    hv = jnp.mean((h - hm) ** 2, axis=-1, keepdims=True)
    hn = (h - hm) / jnp.sqrt(hv + 1e-5) * params["ln_w"] + params["ln_b"]
    xx = jax.nn.softplus(hn)
    mu = xx @ params["w_mu"].T + params["b_mu"]
    std = jax.nn.softplus(xx @ params["w_std"].T + params["b_std"])
    sample = mu + std * eps
    logp = -0.5 * eps ** 2 - jnp.log(std) - 0.5 * math.log(2 * math.pi)
    action = jnp.tanh(sample)
    logp = logp - jnp.log(1 - jnp.tanh(action) ** 2 + 1e-7)
    return action * action_bound, logp


# ----------------------------- main -------------------------------------------

if __name__ == "__main__":
    B, state_dim, hidden_dim, action_dim = 16, 16, 32, 4
    action_bound = 2.0

    key = jax.random.PRNGKey(0)
    k_params, k_x, k_eps = jax.random.split(key, 3)

    params = init_params(k_params, state_dim, hidden_dim, action_dim)
    prepared = prepare_params(params)          # one-time transpose / head fusion
    x = jax.random.normal(k_x, (B, state_dim), jnp.float32)
    eps = jax.random.normal(k_eps, (B, action_dim), jnp.float32)

    # auto tile chooser -> tile_b=8, grid=(2,): exercises the batch-tiled pipeline.
    action, log_prob = policy_net_forward(x, prepared, eps, action_bound)
    action = jax.block_until_ready(action)
    log_prob = jax.block_until_ready(log_prob)

    ref_action, ref_logp = reference_forward(x, params, eps, action_bound)
    assert jnp.allclose(action, ref_action, atol=1e-4, rtol=1e-4)
    assert jnp.allclose(log_prob, ref_logp, atol=1e-4, rtol=1e-4)

    print("KERNEL_OK")
</pallas_src>

<mosaic_0001>
module attributes {stable_mosaic.version = 11 : i64} {
  func.func @policy_net_kernel(%arg0: i32, %arg1: memref<2xf32, #tpu.memory_space<smem>>, %arg2: memref<8x16xf32, #tpu.memory_space<vmem>>, %arg3: memref<16x32xf32, #tpu.memory_space<vmem>>, %arg4: memref<1x32xf32, #tpu.memory_space<vmem>>, %arg5: memref<1x32xf32, #tpu.memory_space<vmem>>, %arg6: memref<1x32xf32, #tpu.memory_space<vmem>>, %arg7: memref<32x8xf32, #tpu.memory_space<vmem>>, %arg8: memref<1x8xf32, #tpu.memory_space<vmem>>, %arg9: memref<8x4xf32, #tpu.memory_space<vmem>>, %arg10: memref<8x8xf32, #tpu.memory_space<vmem>>) attributes {dimension_semantics = [#tpu.dimension_semantics<parallel>], iteration_bounds = array<i64: 2>, scalar_prefetch = 0 : i64, scratch_operands = 0 : i64, tpu.core_type = #tpu.core_type<tc>, window_params = [{transform_indices = @transform_0, window_bounds = array<i64: 2>}, {transform_indices = @transform_1, window_bounds = array<i64: 8, 16>}, {pipeline_mode = #tpu.pipeline_mode<synchronous>, transform_indices = @transform_2, window_bounds = array<i64: 16, 32>}, {pipeline_mode = #tpu.pipeline_mode<synchronous>, transform_indices = @transform_3, window_bounds = array<i64: 1, 32>}, {pipeline_mode = #tpu.pipeline_mode<synchronous>, transform_indices = @transform_4, window_bounds = array<i64: 1, 32>}, {pipeline_mode = #tpu.pipeline_mode<synchronous>, transform_indices = @transform_5, window_bounds = array<i64: 1, 32>}, {pipeline_mode = #tpu.pipeline_mode<synchronous>, transform_indices = @transform_6, window_bounds = array<i64: 32, 8>}, {pipeline_mode = #tpu.pipeline_mode<synchronous>, transform_indices = @transform_7, window_bounds = array<i64: 1, 8>}, {transform_indices = @transform_8, window_bounds = array<i64: 8, 4>}, {transform_indices = @transform_9, window_bounds = array<i64: 8, 8>}]} {
    %c0 = arith.constant 0 : index
    %0 = memref.load %arg1[%c0] : memref<2xf32, #tpu.memory_space<smem>>
    %c1 = arith.constant 1 : index
    %1 = memref.load %arg1[%c1] : memref<2xf32, #tpu.memory_space<smem>>
    %c0_0 = arith.constant 0 : index
    %c0_1 = arith.constant 0 : index
    %2 = vector.load %arg2[%c0_0, %c0_1] : memref<8x16xf32, #tpu.memory_space<vmem>>, vector<8x16xf32>
    %3 = vector.broadcast %0 : f32 to vector<8x16xf32>
    %4 = arith.subf %2, %3 : vector<8x16xf32>
    %5 = vector.broadcast %1 : f32 to vector<8x16xf32>
    %6 = arith.mulf %4, %5 : vector<8x16xf32>
    %c0_2 = arith.constant 0 : index
    %c0_3 = arith.constant 0 : index
    %7 = vector.load %arg3[%c0_2, %c0_3] : memref<16x32xf32, #tpu.memory_space<vmem>>, vector<16x32xf32>
    %cst = arith.constant dense<0.000000e+00> : vector<8x32xf32>
    %8 = tpu.matmul %6, %7, %cst {dimension_numbers = #tpu.dot_dimension_numbers<[1], [0], [0], [1], [0, 0, 1, 1], [], []>} : vector<8x16xf32>, vector<16x32xf32>, vector<8x32xf32> -> vector<8x32xf32>
    %c0_4 = arith.constant 0 : index
    %c0_5 = arith.constant 0 : index
    %9 = vector.load %arg4[%c0_4, %c0_5] : memref<1x32xf32, #tpu.memory_space<vmem>>, vector<1x32xf32>
    %10 = vector.broadcast %9 : vector<1x32xf32> to vector<8x32xf32>
    %11 = arith.addf %8, %10 : vector<8x32xf32>
    %cst_6 = arith.constant dense<0.000000e+00> : vector<8xf32>
    %12 = vector.multi_reduction <add>, %11, %cst_6 [1] : vector<8x32xf32> to vector<8xf32>
    %13 = vector.shape_cast %12 : vector<8xf32> to vector<8x1xf32>
    %cst_7 = arith.constant 3.200000e+01 : f32
    %14 = vector.broadcast %cst_7 : f32 to vector<8x1xf32>
    %15 = arith.divf %13, %14 : vector<8x1xf32>
    %16 = vector.broadcast %15 : vector<8x1xf32> to vector<8x32xf32>
    %17 = arith.subf %11, %16 : vector<8x32xf32>
    %18 = arith.mulf %17, %17 : vector<8x32xf32>
    %cst_8 = arith.constant dense<0.000000e+00> : vector<8xf32>
    %19 = vector.multi_reduction <add>, %18, %cst_8 [1] : vector<8x32xf32> to vector<8xf32>
    %20 = vector.shape_cast %19 : vector<8xf32> to vector<8x1xf32>
    %cst_9 = arith.constant 3.200000e+01 : f32
    %21 = vector.broadcast %cst_9 : f32 to vector<8x1xf32>
    %22 = arith.divf %20, %21 : vector<8x1xf32>
    %23 = vector.broadcast %15 : vector<8x1xf32> to vector<8x32xf32>
    %24 = arith.subf %11, %23 : vector<8x32xf32>
    %cst_10 = arith.constant 9.99999974E-6 : f32
    %25 = vector.broadcast %cst_10 : f32 to vector<8x1xf32>
    %26 = arith.addf %22, %25 : vector<8x1xf32>
    %27 = math.rsqrt %26 : vector<8x1xf32>
    %28 = vector.broadcast %27 : vector<8x1xf32> to vector<8x32xf32>
    %29 = arith.mulf %24, %28 : vector<8x32xf32>
    %c0_11 = arith.constant 0 : index
    %c0_12 = arith.constant 0 : index
    %30 = vector.load %arg5[%c0_11, %c0_12] : memref<1x32xf32, #tpu.memory_space<vmem>>, vector<1x32xf32>
    %31 = vector.broadcast %30 : vector<1x32xf32> to vector<8x32xf32>
    %32 = arith.mulf %29, %31 : vector<8x32xf32>
    %c0_13 = arith.constant 0 : index
    %c0_14 = arith.constant 0 : index
    %33 = vector.load %arg6[%c0_13, %c0_14] : memref<1x32xf32, #tpu.memory_space<vmem>>, vector<1x32xf32>
    %34 = vector.broadcast %33 : vector<1x32xf32> to vector<8x32xf32>
    %35 = arith.addf %32, %34 : vector<8x32xf32>
    %cst_15 = arith.constant 2.000000e+01 : f32
    %36 = vector.broadcast %cst_15 : f32 to vector<8x32xf32>
    %37 = arith.cmpf ogt, %35, %36 : vector<8x32xf32>
    %cst_16 = arith.constant 2.000000e+01 : f32
    %38 = vector.broadcast %cst_16 : f32 to vector<8x32xf32>
    %39 = arith.minimumf %35, %38 : vector<8x32xf32>
    %40 = math.exp %39 : vector<8x32xf32>
    %41 = math.log1p %40 : vector<8x32xf32>
    %42 = arith.select %37, %35, %41 : vector<8x32xi1>, vector<8x32xf32>
    %c0_17 = arith.constant 0 : index
    %c0_18 = arith.constant 0 : index
    %43 = vector.load %arg7[%c0_17, %c0_18] : memref<32x8xf32, #tpu.memory_space<vmem>>, vector<32x8xf32>
    %cst_19 = arith.constant dense<0.000000e+00> : vector<8x8xf32>
    %44 = tpu.matmul %42, %43, %cst_19 {dimension_numbers = #tpu.dot_dimension_numbers<[1], [0], [0], [1], [0, 0, 1, 1], [], []>} : vector<8x32xf32>, vector<32x8xf32>, vector<8x8xf32> -> vector<8x8xf32>
    %c0_20 = arith.constant 0 : index
    %c0_21 = arith.constant 0 : index
    %45 = vector.load %arg8[%c0_20, %c0_21] : memref<1x8xf32, #tpu.memory_space<vmem>>, vector<1x8xf32>
    %46 = vector.broadcast %45 : vector<1x8xf32> to vector<8x8xf32>
    %47 = arith.addf %44, %46 : vector<8x8xf32>
    %48 = vector.extract_strided_slice %47 {offsets = [0, 0], sizes = [8, 4], strides = [1, 1]} : vector<8x8xf32> to vector<8x4xf32>
    %49 = vector.extract_strided_slice %47 {offsets = [0, 4], sizes = [8, 4], strides = [1, 1]} : vector<8x8xf32> to vector<8x4xf32>
    %cst_22 = arith.constant 2.000000e+01 : f32
    %50 = vector.broadcast %cst_22 : f32 to vector<8x4xf32>
    %51 = arith.cmpf ogt, %49, %50 : vector<8x4xf32>
    %cst_23 = arith.constant 2.000000e+01 : f32
    %52 = vector.broadcast %cst_23 : f32 to vector<8x4xf32>
    %53 = arith.minimumf %49, %52 : vector<8x4xf32>
    %54 = math.exp %53 : vector<8x4xf32>
    %55 = math.log1p %54 : vector<8x4xf32>
    %56 = arith.select %51, %49, %55 : vector<8x4xi1>, vector<8x4xf32>
    %c0_24 = arith.constant 0 : index
    %c0_25 = arith.constant 0 : index
    %57 = vector.load %arg9[%c0_24, %c0_25] : memref<8x4xf32, #tpu.memory_space<vmem>>, vector<8x4xf32>
    %58 = arith.mulf %56, %57 : vector<8x4xf32>
    %59 = arith.addf %48, %58 : vector<8x4xf32>
    %cst_26 = arith.constant -5.000000e-01 : f32
    %60 = vector.broadcast %cst_26 : f32 to vector<8x4xf32>
    %61 = arith.mulf %60, %57 : vector<8x4xf32>
    %62 = arith.mulf %61, %57 : vector<8x4xf32>
    %63 = math.log %56 : vector<8x4xf32>
    %64 = arith.subf %62, %63 : vector<8x4xf32>
    %cst_27 = arith.constant 0.918938517 : f32
    %65 = vector.broadcast %cst_27 : f32 to vector<8x4xf32>
    %66 = arith.subf %64, %65 : vector<8x4xf32>
    %67 = math.tanh %59 : vector<8x4xf32>
    %68 = math.tanh %67 : vector<8x4xf32>
    %69 = arith.mulf %68, %68 : vector<8x4xf32>
    %cst_28 = arith.constant 1.000000e+00 : f32
    %70 = vector.broadcast %cst_28 : f32 to vector<8x4xf32>
    %71 = arith.subf %70, %69 : vector<8x4xf32>
    %cst_29 = arith.constant 1.000000e-07 : f32
    %72 = vector.broadcast %cst_29 : f32 to vector<8x4xf32>
    %73 = arith.addf %71, %72 : vector<8x4xf32>
    %74 = math.log %73 : vector<8x4xf32>
    %75 = arith.subf %66, %74 : vector<8x4xf32>
    %cst_30 = arith.constant 2.000000e+00 : f32
    %76 = vector.broadcast %cst_30 : f32 to vector<8x4xf32>
    %77 = arith.mulf %67, %76 : vector<8x4xf32>
    %78 = tpu.concatenate %77, %75 in 1 : vector<8x4xf32>, vector<8x4xf32> -> vector<8x8xf32>
    %c0_31 = arith.constant 0 : index
    %c0_32 = arith.constant 0 : index
    %79 = vector.load %arg10[%c0_31, %c0_32] : memref<8x8xf32, #tpu.memory_space<vmem>>, vector<8x8xf32>
    tpu.vector_store %arg10[%c0_31, %c0_32], %78 {strides = array<i32>} : memref<8x8xf32, #tpu.memory_space<vmem>>, vector<8x8xf32>,
    return
  }
  func.func @transform_0(%arg0: i32) -> i32 {
    %c0_i32 = arith.constant 0 : i32
    %c0_i32_0 = arith.constant 0 : i32
    return %c0_i32 : i32
  }
  func.func @transform_1(%arg0: i32) -> (i32, i32) {
    %c0_i32 = arith.constant 0 : i32
    %c0_i32_0 = arith.constant 0 : i32
    return %arg0, %c0_i32 : i32, i32
  }
  func.func @transform_2(%arg0: i32) -> (i32, i32) {
    %c0_i32 = arith.constant 0 : i32
    %c0_i32_0 = arith.constant 0 : i32
    %c0_i32_1 = arith.constant 0 : i32
    return %c0_i32, %c0_i32_0 : i32, i32
  }
  func.func @transform_3(%arg0: i32) -> (i32, i32) {
    %c0_i32 = arith.constant 0 : i32
    %c0_i32_0 = arith.constant 0 : i32
    %c0_i32_1 = arith.constant 0 : i32
    return %c0_i32, %c0_i32_0 : i32, i32
  }
  func.func @transform_4(%arg0: i32) -> (i32, i32) {
    %c0_i32 = arith.constant 0 : i32
    %c0_i32_0 = arith.constant 0 : i32
    %c0_i32_1 = arith.constant 0 : i32
    return %c0_i32, %c0_i32_0 : i32, i32
  }
  func.func @transform_5(%arg0: i32) -> (i32, i32) {
    %c0_i32 = arith.constant 0 : i32
    %c0_i32_0 = arith.constant 0 : i32
    %c0_i32_1 = arith.constant 0 : i32
    return %c0_i32, %c0_i32_0 : i32, i32
  }
  func.func @transform_6(%arg0: i32) -> (i32, i32) {
    %c0_i32 = arith.constant 0 : i32
    %c0_i32_0 = arith.constant 0 : i32
    %c0_i32_1 = arith.constant 0 : i32
    return %c0_i32, %c0_i32_0 : i32, i32
  }
  func.func @transform_7(%arg0: i32) -> (i32, i32) {
    %c0_i32 = arith.constant 0 : i32
    %c0_i32_0 = arith.constant 0 : i32
    %c0_i32_1 = arith.constant 0 : i32
    return %c0_i32, %c0_i32_0 : i32, i32
  }
  func.func @transform_8(%arg0: i32) -> (i32, i32) {
    %c0_i32 = arith.constant 0 : i32
    %c0_i32_0 = arith.constant 0 : i32
    return %arg0, %c0_i32 : i32, i32
  }
  func.func @transform_9(%arg0: i32) -> (i32, i32) {
    %c0_i32 = arith.constant 0 : i32
    %c0_i32_0 = arith.constant 0 : i32
    return %arg0, %c0_i32 : i32, i32
  }
}

</mosaic_0001>

<bundles_post_ra>
// kernel: tpu_custom_call.1
= control target key start
LH: loop header
LB: loop body
LE: loop exit
PB: predicated region body
PF: predicated region fallthrough
CT: control target
= control target key end

     0   :  { %14 = vsyncpa [#allocation3], 0  ;;  %s887_s30 = smov 0   ;;  %s974_s0 = inlined_call_operand.vmem [shape: f32[2], index: 0, kind: input, shape index: {}]   ;;  %s975_s1 = inlined_call_operand.vmem [shape: f32[16,16], index: 1, kind: input, shape index: {}]   ;;  %s976_s2 = inlined_call_operand.vmem [shape: f32[16,32], index: 2, kind: input, shape index: {}]   ;;  %s977_s3 = inlined_call_operand.vmem [shape: f32[1,32], index: 3, kind: input, shape index: {}]   ;;  %s978_s4 = inlined_call_operand.vmem [shape: f32[1,32], index: 4, kind: input, shape index: {}]   ;;  %s979_s5 = inlined_call_operand.vmem [shape: f32[1,32], index: 5, kind: input, shape index: {}]   ;;  %s980_s6 = inlined_call_operand.vmem [shape: f32[32,8], index: 6, kind: input, shape index: {}]   ;;  %s981_s7 = inlined_call_operand.vmem [shape: f32[1,8], index: 7, kind: input, shape index: {}]   ;;  %s982_s8 = inlined_call_operand.vmem [shape: f32[16,4], index: 8, kind: input, shape index: {}]   ;;  %s983_s9 = inlined_call_operand.vmem [shape: f32[16,8], index: 9, kind: output, shape index: {}]  }
   0x1 LB: > { %s893_s10 = sadd.s32 4294967295, %s829_s30   ;;  %p709_p0 = scmp.ge.s32.totalorder %s829_s30, 1  ;;  %s829_s30 = sphi %s887_s30, %s20_s30  }
   0x2   : > { %p250_p1 = scmp.lt.s32.totalorder %s829_s30, 3  ;;  %s263_s13 = sshll.u32 %s974_s0, 4  ;;  %s264_s13 = int_to_ptr.vmem [resolvable:$true] %s263_s13 }
   0x3   : > { %p770_p3 = scmp.eq.s32.totalorder %s893_s10, 0  ;;  %s804_s15 = scalar_lea.vmem %s264_s13, 16 }
   0x4   : > { %p900_p2 = pnand %p709_p0, %p250_p1  ;;  %p805_p6 = scmp.ne.s32.totalorder %s264_s13, %s804_s15 }
   0x5   : > { %p812_p10 = scmp.lt.s32.totalorder %s264_s13, %s264_s13  ;;  %p813_p11 = scmp.lt.s32.totalorder %s804_s15, %s804_s15 }
   0x6   : > { %p766_p4 = pneg %p900_p2 }
   0x7   : > { %p814_p12 = por %p813_p11, %p812_p10 }
   0x8   : > { %p767_p5 = pnand %p770_p3, %p766_p4 }
   0xa   : > { %p806_p7 = pneg %p767_p5 }
   0xc   : > { %p807_p8 = pnand %p806_p7, %p805_p6 }
   0xe   : > { %p808_p9 = pneg %p807_p8 }
  0x10   : > { %p815_p13 = pnand %p814_p12, %p808_p9 }
  0x12   : > { %818 = shalt.err (!%p815_p13)
}
  0x13   : > { %s831_s16 = smov [#allocation2]   ;;  %308 = sbr.rel (%p900_p2) target bundleno = 1125 (0x465), region = 56 }
  0x14   : > { %769 = dma.vmem_to_smem (!%p767_p5), %s264_s13, 16, %s831_s16, [#allocation3]  }
  0x1a   : > { %824 = dma.done.wait (%p770_p3), [#allocation3], 16  }
  0x1b   : > { %826 = vsyncadd (%p770_p3), [#allocation3], 4294967280 }
  0x1c   : > { %314 = sfence }
  0x1d   : > { %v366_v0 = vld [vmem:[%s976_s2] sm:$0xff]  ;;  %v367_v1 = vld [vmem:[%s976_s2 + $0x8] sm:$0xff]  ;;  %p347_p0 = scmp.lt.s32.totalorder %s893_s10, 1  ;;  %v832_v2 = vmov 0.0|0.0   ;;  %vm833_vm0 = vmmov 0   ;;  %v834_v4 = vmov 0.0  }
  0x1e   : > { %753 = vmatprep.subr.bf16.mxu0 %v832_v2  ;;  %v754_v3 = vpack.c.bf16 %v367_v1, %v366_v0  ;;  %739 = vmatprep.mubr.msk.f32.mxu0 %vm833_vm0, %v834_v4  ;;  %s359_s21 = sld [smem:[#allocation2]]  ;;  %s717_s22 = sld [smem:[#allocation2 + $0x1]]  ;;  %vm375_vm1 = vcmask 130048   ;;  %v718_v10 = vld [vmem:[%s977_s3] ss:$0 sm:$0xff]  ;;  %vm449_vm2 = vcmask 261120  }
  0x1f   : > { %s986_s10 = smov (!%p347_p0, %s893_s10), 1  ;;  %756 = vmatprep.subr.bf16.mxu1 %v832_v2  ;;  %750 = vmatprep.mubr.msk.f32.mxu1 %vm833_vm0, %v834_v4  ;;  %v494_v20 = vld [vmem:[%s980_s6] sm:$0xff]  ;;  %v495_v21 = vld [vmem:[%s980_s6 + $0x8] sm:$0xff]  ;;  %v496_v22 = vld [vmem:[%s980_s6 + $0x10] sm:$0xff]  ;;  %s835_s20 = smov 4   ;;  %vm626_vm7 = vcmask 31744  }
  0x20   : > { %755 = vmatpush3.bf16.msra.mxu0 %v754_v3  ;;  %s923_s23 = sshll.u32 %s986_s10, 3  ;;  %v757_v23 = vpack.c.bf16 %v495_v21, %v494_v20  ;;  %v497_v24 = vld [vmem:[%s980_s6 + $0x18] sm:$0xff]  ;;  %v720_v31 = vld [vmem:[%s978_s4] ss:$0 sm:$0xff]  ;;  %s836_s28 = smov 124   ;;  %vm628_vm8 = vcmask 64512  }
  0x21   : > { %s350_s26 = scalar_lea.vmem %s975_s1, %s923_s23  ;;  %v760_v25 = vpack.c.bf16 %v497_v24, %v496_v22  ;;  %s354_s19 = scalar_lea.vmem %s982_s8, %s923_s23  ;;  %v721_v33 = vld [vmem:[%s979_s5] ss:$0 sm:$0xff] }
  0x22   : > { %v361_v5 = vld [vmem:[%s350_s26] sm:$0xff]  ;;  %758 = vmatpush3.bf16.msra.mxu1 %v757_v23  ;;  %s358_s11 = scalar_lea.vmem %s983_s9, %s923_s23 }
  0x23   : > { %759 = vmatprep.subr.bf16.mxu1 %v832_v2  ;;  %v950_v26 = vld [vmem:[%s354_s19] sm:$0xff] }
  0x24   : > { %v362_v6 = vstv %s359_s21  ;;  %v364_v7 = vstv %s717_s22  ;;  %594 = vrot.lane.b32.xlu1 %v950_v26, %s835_s20  ;;  %v722_v48 = vld [vmem:[%s981_s7] ss:$0 sm:$0xff] }
  0x25   : > { %v363_v8 = vsub.f32 %v361_v5, %v362_v6 }
  0x26   : > { %761 = vmatpush3.bf16.msra.mxu1 %v760_v25 }
  0x27   : > { %v365_v9 = vmul.f32 %v364_v7, %v363_v8 }
  0x29   : > { %740 = vmatmul.mubr.msk.f32.vlgmr.msra.gmra.mrb[0].mxu0 %vm375_vm1, %v365_v9 }
  0x96   : > { %v595_v62 = vpop.permute.xlu1 %594 }
  0xfc   : > { %v445_v11 = vpop.f32.mrb[0].mxu0 }
  0xfd   : > { %v446_v12 = vadd.f32 %v718_v10, %v445_v11  ;;  %v741_v13 = vpop.f32.mrb[1].mxu0  ;;  %v603_v11 = vmul.f32 -0.5, %v950_v26 }
  0xff   : > { %v450_v14 = vsel %vm449_vm2, %v446_v12, 0.0 }
 0x100   : > { %451 = vadd.xlane.f32.xlu0 %v450_v14 }
 0x18d   : > { %v452_v15 = vpop.xlane.xlu0 %451 }
 0x18e   : > { %v454_v16 = vmul.f32 0.03125, %v452_v15 }
 0x190   : > { %v455_v17 = vsub.f32 %v446_v12, %v454_v16  ;;  %v604_v12 = vmul.f32 %v603_v11, %v950_v26 }
 0x192   : > { %v456_v18 = vmul.f32 %v455_v17, %v455_v17 }
 0x194   : > { %v457_v19 = vsel %vm449_vm2, %v456_v18, 0.0 }
 0x195   : > { %458 = vadd.xlane.f32.xlu0 %v457_v19 }
 0x222   : > { %v459_v27 = vpop.xlane.xlu0 %458 }
 0x223   : > { %v460_v28 = vmul.f32 0.03125, %v459_v27 }
 0x225   : > { %v461_v29 = vadd.f32 1e-05, %v460_v28 }
 0x227   : > { %786 = vrsqrt.f32 %v461_v29 }
 0x231   : > { %v787_v30 = vpop.eup %786 }
 0x232   : > { %v463_v32 = vmul.f32 %v787_v30, %v455_v17 }
 0x234   : > { %v471_v34 = vmul.f32 %v720_v31, %v463_v32 }
 0x236   : > { %v479_v35 = vadd.f32 %v721_v33, %v471_v34 }
 0x238   : > { %v481_v36 = vmin.f32 %v479_v35, 20.0  ;;  %vm480_vm4 = vcmp.gt.f32.partialorder %v479_v35, 20.0 }
 0x23a   : > { %v482_v37 = vmul.f32 1.442695, %v481_v36 }
 0x23c   : > { %788 = vpow2.f32 %v482_v37 }
 0x246   : > { %v789_v38 = vpop.eup %788 }
 0x247   : > { %v484_v39 = vadd.f32 1.0, %v789_v38  ;;  %v487_v40 = vmul.f32 -0.5, %v789_v38  ;;  %v490_v42 = vand.u32 2147483647, %v789_v38 }
 0x249   : > { %790 = vlog2.f32 %v484_v39  ;;  %v488_v41 = vadd.f32 1.0, %v487_v40  ;;  %vm491_vm3 = vcmp.lt.f32.partialorder %v490_v42, 0.0004427343 }
 0x24b   : > { %v489_v45 = vmul.f32 %v789_v38, %v488_v41 }
 0x253   : > { %v791_v43 = vpop.eup %790 }
 0x254   : > { %v486_v44 = vmul.f32 0.6931472, %v791_v43 }
 0x256   : > { %v492_v46 = vsel %vm491_vm3, %v489_v45, %v486_v44 }
 0x257   : > { %v493_v47 = vsel %vm480_vm4, %v479_v35, %v492_v46 }
 0x258   : > { %751 = vmatmul.mubr.msk.f32.vlgmr.msra.gmra.mrb[0].mxu1 %vm449_vm2, %v493_v47 }
 0x32b   : > { %v574_v49 = vpop.f32.mrb[0].mxu1 }
 0x32c   : > { %v575_v50 = vadd.f32 %v722_v48, %v574_v49  ;;  %v752_v51 = vpop.f32.mrb[1].mxu1 }
 0x32e   : > { %v579_v52 = vmin.f32 %v575_v50, 20.0  ;;  %vm578_vm6 = vcmp.gt.f32.partialorder %v575_v50, 20.0 }
 0x330   : > { %v580_v53 = vmul.f32 1.442695, %v579_v52 }
 0x332   : > { %792 = vpow2.f32 %v580_v53 }
 0x33c   : > { %v793_v54 = vpop.eup %792 }
 0x33d   : > { %v582_v55 = vadd.f32 1.0, %v793_v54  ;;  %v585_v56 = vmul.f32 -0.5, %v793_v54  ;;  %v588_v58 = vand.u32 2147483647, %v793_v54 }
 0x33f   : > { %794 = vlog2.f32 %v582_v55  ;;  %v586_v57 = vadd.f32 1.0, %v585_v56  ;;  %vm589_vm5 = vcmp.lt.f32.partialorder %v588_v58, 0.0004427343 }
 0x341   : > { %v587_v61 = vmul.f32 %v793_v54, %v586_v57 }
 0x349   : > { %v795_v59 = vpop.eup %794 }
 0x34a   : > { %v584_v60 = vmul.f32 0.6931472, %v795_v59 }
 0x34c   : > { %v590_v63 = vsel %vm589_vm5, %v587_v61, %v584_v60 }
 0x34d   : > { %v591_v0 = vsel %vm578_vm6, %v575_v50, %v590_v63 }
 0x34e   : > { %v597_v1 = vmul.f32 %v595_v62, %v591_v0  ;;  %796 = vlog2.f32 %v591_v0 }
 0x350   : > { %599 = vrot.lane.b32.xlu1 %v597_v1, %s836_s28 }
 0x358   : > { %v797_v2 = vpop.eup %796 }
 0x359   : > { %v606_v3 = vmul.f32 0.6931472, %v797_v2 }
 0x35b   : > { %608 = vrot.lane.b32.xlu0 %v606_v3, %s836_s28 }
 0x3c2   : > { %v600_v4 = vpop.permute.xlu1 %599 }
 0x3c3   : > { %v602_v5 = vadd.f32 %v600_v4, %v575_v50 }
 0x3c5   : > { %798 = vtanh.f32 %v602_v5 }
 0x3cd   : > { %v609_v13 = vpop.permute.xlu0 %608 }
 0x3ce   : > { %v611_v14 = vsub.f32 %v604_v12, %v609_v13 }
 0x3cf   : > { %v799_v6 = vpop.eup %798 }
 0x3d0   : > { %800 = vtanh.f32 %v799_v6  ;;  %v724_v16 = vadd.f32 -0.9189385, %v611_v14  ;;  %v621_v19 = vmul.f32 2.0, %v799_v6 }
 0x3da   : > { %v801_v7 = vpop.eup %800 }
 0x3db   : > { %v615_v8 = vmul.f32 %v801_v7, %v801_v7 }
 0x3dd   : > { %v616_v9 = vsub.f32 1.0, %v615_v8 }
 0x3df   : > { %v617_v10 = vadd.f32 1e-07, %v616_v9 }
 0x3e1   : > { %802 = vlog2.f32 %v617_v10 }
 0x3eb   : > { %v803_v15 = vpop.eup %802 }
 0x3ec   : > { %v619_v17 = vmul.f32 0.6931472, %v803_v15 }
 0x3ee   : > { %v620_v18 = vsub.f32 %v724_v16, %v619_v17 }
 0x3f0   : > { %623 = vrot.lane.b32.xlu1 %v620_v18, %s835_s20 }
 0x462   : > { %v624_v20 = vpop.permute.xlu1 %623 }
 0x463   : > { %v627_v21 = vsel %vm626_vm7, %v621_v19, %v624_v20 }
 0x464   : > { %629 = vst.msk [vmem:[%s358_s11] sm:$0xff] %vm628_vm8, %v627_v21 }
 0x465 PF: > { %s20_s30 = sadd.s32 1, %s829_s30  }
 0x466   : > { %p17_p1 = scmp.ge.s32.totalorder %s20_s30, 4  }
 0x468   :  { %19 = sbr.rel (!%p17_p1) target bundleno = 1 (0x1), region = 94 }
 0x46f   :  { %649 = vsyncpa [#allocation3], 1 }
 0x470   :  { %651 = vsyncpa [#allocation3 + $0x1], 1 }

</bundles_post_ra>
